<compile_context>
chip_gen: v5e
topology: v5e:2x2
jax: 0.10.0
libtpu: 0.0.40
codegen_flags: <defaults>
</compile_context>

<pallas_src>
import functools

import jax
import jax.numpy as jnp
import numpy as np
from jax.experimental import pallas as pl
from jax.experimental.pallas import tpu as pltpu

# ----------------------------- model config ---------------------------------
DIM = 64
MULTIPLE_OF = 32
FFN_DIM_MULTIPLIER = None
BATCH = 2
SEQ = 8


def _ffn_hidden(dim: int, hidden_dim: int, multiple_of: int, ffn_dim_multiplier):
    hidden_dim = int(2 * hidden_dim / 3)
    if ffn_dim_multiplier is not None:
        hidden_dim = int(ffn_dim_multiplier * hidden_dim)
    hidden_dim = multiple_of * ((hidden_dim + multiple_of - 1) // multiple_of)
    return hidden_dim


HIDDEN = _ffn_hidden(DIM, 4 * DIM, MULTIPLE_OF, FFN_DIM_MULTIPLIER)  # 192


# --------------------------- one-time weight prep ----------------------------
def prepare_ffn_weights(w1, w2, w3, *, tk):
    """Call ONCE at parameter init (outside the per-token hot path).

    w1/w3: (dim, hidden), w2: (hidden, dim), all f32 in (in, out) layout.
    Returns (w13_bf16, w2_bf16) where w13 has shape (dim, (hidden//tk)*2*tk)
    and hidden tile k occupies columns [k*2*tk, (k+1)*2*tk) laid out as
    [w1_tile | w3_tile], so a single BlockSpec block feeds both SwiGLU branches.
    """
    dim, hidden = w1.shape
    assert hidden % tk == 0, "hidden must be divisible by the hidden tile size"
    kt = hidden // tk
    w1t = w1.reshape(dim, kt, tk)
    w3t = w3.reshape(dim, kt, tk)
    w13 = jnp.concatenate([w1t, w3t], axis=-1).reshape(dim, kt * 2 * tk)
    return w13.astype(jnp.bfloat16), w2.astype(jnp.bfloat16)


# ------------------------------- kernel -------------------------------------
def ffn_kernel(x_ref, w13_ref, w2_ref, out_ref, acc_ref, *, tk):
    # Grid: (token_tile i, hidden_tile k); k is the reduction axis (last).
    k = pl.program_id(1)

    @pl.when(k == 0)
    def _init():
        acc_ref[...] = jnp.zeros_like(acc_ref)

    # Fused, lane-dense up-projection for this hidden tile:
    #   (tm, dim) @ (dim, 2*tk) -> (tm, 2*tk), f32 accumulation on the MXU.
    r = jnp.dot(x_ref[...], w13_ref[...], preferred_element_type=jnp.float32)
    g = r[:, :tk]   # w1 branch (static, 128-aligned slice — free)
    u = r[:, tk:]   # w3 branch

    # SwiGLU elementwise math in f32 (VPU/EUP; do NOT narrow to bf16 on v5e).
    act = (g * jax.lax.logistic(g)) * u

    # Partial down-projection contribution, accumulated in f32 VMEM scratch.
    acc_ref[...] += jnp.dot(act.astype(jnp.bfloat16), w2_ref[...],
                            preferred_element_type=jnp.float32)

    @pl.when(k == pl.num_programs(1) - 1)
    def _finalize():
        out_ref[...] = acc_ref[...].astype(out_ref.dtype)


# ------------------------------- wrapper -------------------------------------
def feed_forward(x, w13_bf16, w2_bf16, *, tm=None, tk=None,
                 out_dtype=jnp.float32):
    """x: (B, S, dim) f32/bf16; w13_bf16/w2_bf16 from prepare_ffn_weights.

    tm: token-tile rows (leading grid axis, "parallel" -> v7x megacore).
    tk: hidden-tile width (reduction grid axis, "arbitrary", last).
    """
    B, S, dim = x.shape
    T = B * S
    hidden = w2_bf16.shape[0]

    if tm is None:
        tm = T if T <= 256 else 256           # demo-friendly default
    if tk is None:
        tk = hidden if hidden <= 512 else 512  # size per generation at real dims
    assert T % tm == 0 and hidden % tk == 0
    mt, kt = T // tm, hidden // tk

    # Flatten tokens and cast the activation stream to bf16 once, wrapper-side.
    x2 = x.reshape(T, dim).astype(jnp.bfloat16)

    kernel = functools.partial(ffn_kernel, tk=tk)
    out = pl.pallas_call(
        kernel,
        out_shape=jax.ShapeDtypeStruct((T, dim), out_dtype),
        grid_spec=pltpu.PrefetchScalarGridSpec(
            num_scalar_prefetch=0,
            grid=(mt, kt),  # reduction (hidden) axis last
            in_specs=[
                pl.BlockSpec((tm, dim), lambda i, k: (i, 0)),       # x row tile
                pl.BlockSpec((dim, 2 * tk), lambda i, k: (0, k)),   # fused [w1|w3] tile
                pl.BlockSpec((tk, dim), lambda i, k: (k, 0)),       # w2 tile
            ],
            out_specs=pl.BlockSpec((tm, dim), lambda i, k: (i, 0)),  # resident acc target
            scratch_shapes=[pltpu.VMEM((tm, dim), jnp.float32)],
        ),
        compiler_params=pltpu.CompilerParams(
            dimension_semantics=("parallel", "arbitrary")),
    )(x2, w13_bf16, w2_bf16)
    return out.reshape(B, S, dim)


# --------------------------- pure-JAX reference -------------------------------
def reference_ffn(x, w1, w2, w3):
    # f32 reference matching the PyTorch module: w2(F.silu(w1(x)) * w3(x))
    g = x @ w1
    u = x @ w3
    return (jax.nn.silu(g) * u) @ w2


# --------------------------------- main ---------------------------------------
if __name__ == "__main__":
    key = jax.random.PRNGKey(0)
    ks = jax.random.split(key, 4)

    x = jax.random.normal(ks[0], (BATCH, SEQ, DIM), dtype=jnp.float32)

    scale = 0.05
    w1 = jax.random.normal(ks[1], (DIM, HIDDEN), jnp.float32) * scale
    w3 = jax.random.normal(ks[2], (DIM, HIDDEN), jnp.float32) * scale
    w2 = jax.random.normal(ks[3], (HIDDEN, DIM), jnp.float32) * scale

    # One-time (init-time) weight prep: fuse w1|w3 per hidden tile, cast bf16.
    tk = HIDDEN  # single hidden tile at the demo size; shrink per-gen at real dims
    w13_b, w2_b = prepare_ffn_weights(w1, w2, w3, tk=tk)

    out = jax.block_until_ready(feed_forward(x, w13_b, w2_b, tk=tk))
    ref = jax.block_until_ready(reference_ffn(x, w1, w2, w3))

    np.testing.assert_allclose(np.asarray(out), np.asarray(ref),
                               rtol=1e-2, atol=1e-2)
    print("KERNEL_OK")
</pallas_src>

<mosaic_0001>
module attributes {stable_mosaic.version = 11 : i64} {
  func.func @ffn_kernel(%arg0: i32, %arg1: i32, %arg2: memref<16x64xbf16, #tpu.memory_space<vmem>>, %arg3: memref<64x384xbf16, #tpu.memory_space<vmem>>, %arg4: memref<192x64xbf16, #tpu.memory_space<vmem>>, %arg5: memref<16x64xf32, #tpu.memory_space<vmem>>, %arg6: memref<16x64xf32, #tpu.memory_space<vmem>>) attributes {dimension_semantics = [#tpu.dimension_semantics<parallel>, #tpu.dimension_semantics<arbitrary>], iteration_bounds = array<i64: 1, 1>, scalar_prefetch = 0 : i64, scratch_operands = 1 : i64, tpu.core_type = #tpu.core_type<tc>, window_params = [{transform_indices = @transform_0, window_bounds = array<i64: 16, 64>}, {transform_indices = @transform_1, window_bounds = array<i64: 64, 384>}, {transform_indices = @transform_2, window_bounds = array<i64: 192, 64>}, {transform_indices = @transform_3, window_bounds = array<i64: 16, 64>}]} {
    %c0_i32 = arith.constant 0 : i32
    %0 = arith.cmpi eq, %arg1, %c0_i32 : i32
    %1 = arith.extui %0 : i1 to i32
    %c0_i32_0 = arith.constant 0 : i32
    %2 = arith.cmpi ne, %1, %c0_i32_0 : i32
    scf.if %2 {
      %cst_14 = arith.constant 0.000000e+00 : f32
      %24 = vector.broadcast %cst_14 : f32 to vector<16x64xf32>
      %c0_15 = arith.constant 0 : index
      %c0_16 = arith.constant 0 : index
      %25 = vector.load %arg6[%c0_15, %c0_16] : memref<16x64xf32, #tpu.memory_space<vmem>>, vector<16x64xf32>
      tpu.vector_store %arg6[%c0_15, %c0_16], %24 {strides = array<i32>} : memref<16x64xf32, #tpu.memory_space<vmem>>, vector<16x64xf32>,
    } else {
    }
    %c0 = arith.constant 0 : index
    %c0_1 = arith.constant 0 : index
    %3 = vector.load %arg2[%c0, %c0_1] : memref<16x64xbf16, #tpu.memory_space<vmem>>, vector<16x64xbf16>
    %c0_2 = arith.constant 0 : index
    %c0_3 = arith.constant 0 : index
    %4 = vector.load %arg3[%c0_2, %c0_3] : memref<64x384xbf16, #tpu.memory_space<vmem>>, vector<64x384xbf16>
    %cst = arith.constant dense<0.000000e+00> : vector<16x384xf32>
    %5 = tpu.matmul %3, %4, %cst {dimension_numbers = #tpu.dot_dimension_numbers<[1], [0], [0], [1], [0, 0, 1, 1], [], []>} : vector<16x64xbf16>, vector<64x384xbf16>, vector<16x384xf32> -> vector<16x384xf32>
    %6 = vector.extract_strided_slice %5 {offsets = [0, 0], sizes = [16, 192], strides = [1, 1]} : vector<16x384xf32> to vector<16x192xf32>
    %7 = vector.extract_strided_slice %5 {offsets = [0, 192], sizes = [16, 192], strides = [1, 1]} : vector<16x384xf32> to vector<16x192xf32>
    %8 = arith.negf %6 : vector<16x192xf32>
    %9 = math.exp %8 : vector<16x192xf32>
    %cst_4 = arith.constant 1.000000e+00 : f32
    %10 = vector.broadcast %cst_4 : f32 to vector<16x192xf32>
    %11 = arith.addf %10, %9 : vector<16x192xf32>
    %12 = arith.divf %10, %11 : vector<16x192xf32>
    %13 = arith.mulf %6, %12 : vector<16x192xf32>
    %14 = arith.mulf %13, %7 : vector<16x192xf32>
    %c0_5 = arith.constant 0 : index
    %c0_6 = arith.constant 0 : index
    %15 = vector.load %arg6[%c0_5, %c0_6] : memref<16x64xf32, #tpu.memory_space<vmem>>, vector<16x64xf32>
    %16 = arith.truncf %14 : vector<16x192xf32> to vector<16x192xbf16>
    %c0_7 = arith.constant 0 : index
    %c0_8 = arith.constant 0 : index
    %17 = vector.load %arg4[%c0_7, %c0_8] : memref<192x64xbf16, #tpu.memory_space<vmem>>, vector<192x64xbf16>
    %cst_9 = arith.constant dense<0.000000e+00> : vector<16x64xf32>
    %18 = tpu.matmul %16, %17, %cst_9 {dimension_numbers = #tpu.dot_dimension_numbers<[1], [0], [0], [1], [0, 0, 1, 1], [], []>} : vector<16x192xbf16>, vector<192x64xbf16>, vector<16x64xf32> -> vector<16x64xf32>
    %19 = arith.addf %15, %18 : vector<16x64xf32>
    %c0_10 = arith.constant 0 : index
    %c0_11 = arith.constant 0 : index
    %20 = vector.load %arg6[%c0_10, %c0_11] : memref<16x64xf32, #tpu.memory_space<vmem>>, vector<16x64xf32>
    tpu.vector_store %arg6[%c0_10, %c0_11], %19 {strides = array<i32>} : memref<16x64xf32, #tpu.memory_space<vmem>>, vector<16x64xf32>,
    %c0_i32_12 = arith.constant 0 : i32
    %21 = arith.cmpi eq, %arg1, %c0_i32_12 : i32
    %22 = arith.extui %21 : i1 to i32
    %c0_i32_13 = arith.constant 0 : i32
    %23 = arith.cmpi ne, %22, %c0_i32_13 : i32
    scf.if %23 {
      %c0_14 = arith.constant 0 : index
      %c0_15 = arith.constant 0 : index
      %24 = vector.load %arg6[%c0_14, %c0_15] : memref<16x64xf32, #tpu.memory_space<vmem>>, vector<16x64xf32>
      %c0_16 = arith.constant 0 : index
      %c0_17 = arith.constant 0 : index
      %25 = vector.load %arg5[%c0_16, %c0_17] : memref<16x64xf32, #tpu.memory_space<vmem>>, vector<16x64xf32>
      tpu.vector_store %arg5[%c0_16, %c0_17], %24 {strides = array<i32>} : memref<16x64xf32, #tpu.memory_space<vmem>>, vector<16x64xf32>,
    } else {
    }
    return
  }
  func.func @transform_0(%arg0: i32, %arg1: i32) -> (i32, i32) {
    %c0_i32 = arith.constant 0 : i32
    %c0_i32_0 = arith.constant 0 : i32
    return %arg0, %c0_i32 : i32, i32
  }
  func.func @transform_1(%arg0: i32, %arg1: i32) -> (i32, i32) {
    %c0_i32 = arith.constant 0 : i32
    %c0_i32_0 = arith.constant 0 : i32
    return %c0_i32, %arg1 : i32, i32
  }
  func.func @transform_2(%arg0: i32, %arg1: i32) -> (i32, i32) {
    %c0_i32 = arith.constant 0 : i32
    %c0_i32_0 = arith.constant 0 : i32
    return %arg1, %c0_i32 : i32, i32
  }
  func.func @transform_3(%arg0: i32, %arg1: i32) -> (i32, i32) {
    %c0_i32 = arith.constant 0 : i32
    %c0_i32_0 = arith.constant 0 : i32
    return %arg0, %c0_i32 : i32, i32
  }
}

</mosaic_0001>

<bundles_post_ra>
// kernel: tpu_custom_call.1
= control target key start
LH: loop header
LB: loop body
LE: loop exit
PB: predicated region body
PF: predicated region fallthrough
CT: control target
= control target key end

     0   :  { %s821_s0 = inlined_call_operand.vmem [shape: bf16[16,64], index: 0, kind: input, shape index: {}]   ;;  %s822_s1 = inlined_call_operand.vmem [shape: bf16[64,384], index: 1, kind: input, shape index: {}]   ;;  %s823_s2 = inlined_call_operand.vmem [shape: bf16[192,64], index: 2, kind: input, shape index: {}]   ;;  %s824_s3 = inlined_call_operand.hbm [shape: f32[16,64], index: 3, kind: output, shape index: {}]  }
   0x1   :  { %v536_v0 = vld [vmem:[%s822_s1 + $0x4c] sm:$0xf]  ;;  %v462_v1 = vld [vmem:[%s822_s1 + $0x54] sm:$0xf0]  ;;  %v468_v2 = vld [vmem:[%s822_s1 + $0x50] sm:$0xf] }
   0x2   :  { %v465_v3 = vor.u32 %v536_v0, %v462_v1  ;;  %v538_v4 = vld [vmem:[%s822_s1 + $0x58] sm:$0xf0]  ;;  %v533_v5 = vld [vmem:[%s822_s1 + $0x34] sm:$0xf]  ;;  %v450_v6 = vld [vmem:[%s822_s1 + $0x3c] sm:$0xf0] }
   0x3   :  { %v469_v7 = vor.u32 %v538_v4, %v468_v2  ;;  %v456_v8 = vld [vmem:[%s822_s1 + $0x38] sm:$0xf]  ;;  %v535_v9 = vld [vmem:[%s822_s1 + $0x40] sm:$0xf0]  ;;  %v453_v10 = vor.u32 %v533_v5, %v450_v6  ;;  %v530_v12 = vld [vmem:[%s822_s1 + $0x1c] sm:$0xf] }
   0x4   :  { %132 = vmatpush.bf16.msra.mxu1 %v465_v3  ;;  %v457_v11 = vor.u32 %v535_v9, %v456_v8  ;;  %v438_v13 = vld [vmem:[%s822_s1 + $0x24] sm:$0xf0]  ;;  %v444_v14 = vld [vmem:[%s822_s1 + $0x20] sm:$0xf]  ;;  %v532_v15 = vld [vmem:[%s822_s1 + $0x28] sm:$0xf0] }
   0x5   :  { %146 = vmatpush.bf16.msra.mxu2 %v469_v7  ;;  %v460_v16 = vld [vmem:[%s822_s1 + $0x48] sm:$0xf]  ;;  %v537_v17 = vld [vmem:[%s822_s1 + $0x50] sm:$0xf0]  ;;  %v448_v18 = vld [vmem:[%s822_s1 + $0x30] sm:$0xf]  ;;  %v441_v20 = vor.u32 %v530_v12, %v438_v13  ;;  %v445_v22 = vor.u32 %v532_v15, %v444_v14 }
   0x6   :  { %v534_v19 = vld [vmem:[%s822_s1 + $0x38] sm:$0xf0]  ;;  %v461_v21 = vor.u32 %v537_v17, %v460_v16  ;;  %v527_v23 = vld [vmem:[%s822_s1 + $0x4] sm:$0xf]  ;;  %v426_v24 = vld [vmem:[%s822_s1 + $0xc] sm:$0xf0] }
   0x8   :  { %133 = vmatpush.bf16.msra.mxu1 %v453_v10 }
   0x9   :  { %147 = vmatpush.bf16.msra.mxu2 %v457_v11 }
   0xa   :  { %8 = vsyncpa [#allocation4], 0  ;;  %v432_v25 = vld [vmem:[%s822_s1 + $0x8] sm:$0xf]  ;;  %v529_v26 = vld [vmem:[%s822_s1 + $0x10] sm:$0xf0]  ;;  %118 = vmatpush.bf16.msra.mxu0 %v461_v21  ;;  %v449_v27 = vor.u32 %v534_v19, %v448_v18  ;;  %v429_v30 = vor.u32 %v527_v23, %v426_v24 }
   0xb   :  { %v436_v28 = vld [vmem:[%s822_s1 + $0x18] sm:$0xf]  ;;  %v531_v29 = vld [vmem:[%s822_s1 + $0x20] sm:$0xf0]  ;;  %v433_v31 = vor.u32 %v529_v26, %v432_v25  ;;  %v424_v34 = vld [vmem:[%s822_s1] sm:$0xf] }
   0xc   :  { %134 = vmatpush.bf16.msra.mxu1 %v441_v20  ;;  %v437_v32 = vor.u32 %v531_v29, %v436_v28  ;;  %v526_v33 = vld [vmem:[%s821_s0] sm:$0xff]  ;;  %v528_v35 = vld [vmem:[%s822_s1 + $0x8] sm:$0xf0]  ;;  %vm20_vm0 = vcmask 523264   ;;  %s598_s0 = smov 64   ;;  %v546_v40 = vld [vmem:[%s823_s2 + $0x38] sm:$0xff] }
   0xd   :  { %148 = vmatpush.bf16.msra.mxu2 %v445_v22  ;;  %v425_v36 = vor.u32 %v528_v35, %v424_v34  ;;  %361 = vmatpush.bf16.msra.mxu3 %v546_v40  ;;  %v545_v41 = vld [vmem:[%s823_s2 + $0x30] sm:$0xff]  ;;  %v544_v43 = vld [vmem:[%s823_s2 + $0x28] sm:$0xff]  ;;  %v543_v50 = vld [vmem:[%s823_s2 + $0x20] sm:$0xff]  ;;  %s406_s7 = sshll.u32 %s824_s3, 4  ;;  %s602_s1 = smov 8   ;;  %s407_s7 = int_to_ptr.hbm [resolvable:$true] %s406_s7 }
   0xe   :  { %119 = vmatpush.bf16.msra.mxu0 %v449_v27  ;;  %v550_v51 = vld [vmem:[%s823_s2 + $0x58] sm:$0xff]  ;;  %v549_v56 = vld [vmem:[%s823_s2 + $0x50] sm:$0xff]  ;;  %v548_v61 = vld [vmem:[%s823_s2 + $0x48] sm:$0xff] }
   0xf   :  { %v542_v52 = vld [vmem:[%s823_s2 + $0x18] sm:$0xff]  ;;  %v541_v59 = vld [vmem:[%s823_s2 + $0x10] sm:$0xff]  ;;  %v540_v63 = vld [vmem:[%s823_s2 + $0x8] sm:$0xff] }
  0x10   :  { %135 = vmatpush.bf16.msra.mxu1 %v429_v30  ;;  %v547_v1 = vld [vmem:[%s823_s2 + $0x40] sm:$0xff] }
  0x11   :  { %149 = vmatpush.bf16.msra.mxu2 %v433_v31  ;;  %362 = vmatpush.bf16.msra.mxu3 %v545_v41  ;;  %v539_v2 = vld [vmem:[%s823_s2] sm:$0xff]  ;;  %s600_s2 = smov [#allocation3]  }
  0x12   :  { %120 = vmatpush.bf16.msra.mxu0 %v437_v32  ;;  %s404_s4 = sshll.u32 %s600_s2, 4  ;;  %s405_s4 = int_to_ptr.vmem [resolvable:$true] %s404_s4 }
  0x13   :  { %471 = vmatmul.msk.bf16.vlgmr.msra.gmra.mxu1 %vm20_vm0, %v526_v33 }
  0x14   :  { %472 = vmatmul.msk.bf16.vlgmr.msra.gmra.mxu2 %vm20_vm0, %v526_v33 }
  0x15   :  { %363 = vmatpush.bf16.msra.mxu3 %v544_v43 }
  0x16   :  { %121 = vmatpush.bf16.msra.mxu0 %v425_v36 }
  0x19   :  { %470 = vmatmul.msk.bf16.vlgmr.msra.gmra.mxu0 %vm20_vm0, %v526_v33  ;;  %364 = vmatpush.bf16.msra.mxu3 %v543_v50 }
  0x1a   :  { %379 = vmatpush.bf16.msrb.mxu0 %v550_v51 }
  0x1d   :  { %365 = vmatpush.bf16.msra.mxu3 %v542_v52 }
  0x1e   :  { %380 = vmatpush.bf16.msrb.mxu0 %v549_v56 }
  0x21   :  { %366 = vmatpush.bf16.msra.mxu3 %v541_v59 }
  0x22   :  { %381 = vmatpush.bf16.msrb.mxu0 %v548_v61 }
  0x25   :  { %367 = vmatpush.bf16.msra.mxu3 %v540_v63 }
  0x26   :  { %382 = vmatpush.bf16.msrb.mxu0 %v547_v1 }
  0x29   :  { %368 = vmatpush.bf16.msra.mxu3 %v539_v2 }
  0x90   :  { %v701_v37 = vpop.f32.mrf.mxu1 }
  0x91   :  { %240 = vrot.lane.b32.xlu0 %v701_v37, %s598_s0  ;;  %v474_v45 = vmul.f32 -1.442695, %v701_v37 }
  0x93   :  { %556 = vpow2.f32 %v474_v45 }
  0x96   :  { %v716_v44 = vpop.f32.mrf.mxu0 }
  0x97   :  { %v151_v38 = vpop.f32.mrf.mxu2  ;;  %v473_v47 = vmul.f32 -1.442695, %v716_v44 }
  0x98   :  { %v704_v39 = vpop.f32.mrf.mxu1 }
  0x99   :  { %242 = vrot.lane.b32.xlu0 %v151_v38, %s598_s0  ;;  %244 = vrot.lane.b32.xlu1 %v704_v39, %s598_s0  ;;  %v476_v48 = vmul.f32 -1.442695, %v704_v39  ;;  %558 = vpow2.f32 %v473_v47  ;;  %v557_v53 = vpop.eup %556 }
  0x9a   :  { %v736_v58 = vadd.f32 1.0, %v557_v53 }
  0x9b   :  { %560 = vpow2.f32 %v476_v48 }
  0x9c   :  { %vm192_vm4 = vweird.f32 %v736_v58  ;;  %v198_v20 = vand.u32 2147483648, %v736_v58  ;;  %v196_v34 = vand.u32 2147483647, %v736_v58 }
  0x9e   :  { %v719_v46 = vpop.f32.mrf.mxu0  ;;  %v199_v36 = vor.u32 1.1754944e-38, %v198_v20 }
  0x9f   :  { %v153_v42 = vpop.f32.mrf.mxu2  ;;  %v475_v49 = vmul.f32 -1.442695, %v719_v46  ;;  %v559_v54 = vpop.eup %558 }
  0xa0   :  { %v741_v60 = vadd.f32 1.0, %v559_v54 }
  0xa1   :  { %246 = vrot.lane.b32.xlu1 %v153_v42, %s598_s0  ;;  %562 = vpow2.f32 %v475_v49  ;;  %v561_v55 = vpop.eup %560  ;;  %s601_s0 = smov 128  }
  0xa2   :  { %v746_v62 = vadd.f32 1.0, %v561_v55  ;;  %564 = vrcp.f32 %v736_v58  ;;  %vm177_vm2 = vweird.f32 %v741_v60  ;;  %v181_v21 = vand.u32 2147483647, %v741_v60 }
  0xa3   :  { %566 = vrcp.f32 %v741_v60  ;;  %v183_v22 = vand.u32 2147483648, %v741_v60 }
  0xa4   :  { %568 = vrcp.f32 %v746_v62  ;;  %v228_v27 = vand.u32 2147483648, %v746_v62  ;;  %vm222_vm10 = vweird.f32 %v746_v62  ;;  %v226_v32 = vand.u32 2147483647, %v746_v62 }
  0xa5   :  { %vm793_vm13 = vcmp.eq.f32.partialorder %v181_v21, 8.507059e+37  ;;  %v184_v41 = vor.u32 1.1754944e-38, %v183_v22 }
  0xa6   :  { %v229_v45 = vor.u32 1.1754944e-38, %v228_v27  ;;  %vm227_vm15 = vcmp.eq.f32.partialorder %v226_v32, 8.507059e+37 }
  0xa7   :  { %v563_v57 = vpop.eup %562 }
  0xa8   :  { %v751_v0 = vadd.f32 1.0, %v563_v57  ;;  %v565_v3 = vpop.eup %564 }
  0xa9   :  { %v567_v4 = vpop.eup %566  ;;  %v188_v8 = vmul.f32 %v565_v3, %v736_v58  ;;  %vm193_vm1 = vweird.f32 %v565_v3 }
  0xaa   :  { %570 = vrcp.f32 %v751_v0  ;;  %v569_v5 = vpop.eup %568  ;;  %v173_v9 = vmul.f32 %v567_v4, %v741_v60  ;;  %vm178_vm3 = vweird.f32 %v567_v4  ;;  %vm207_vm5 = vweird.f32 %v751_v0  ;;  %vm774_vm8 = vmor %vm192_vm4, %vm193_vm1 }
  0xab   :  { %v218_v7 = vmul.f32 %v569_v5, %v746_v62  ;;  %v189_v12 = vsub.f32 1.0, %v188_v8  ;;  %vm223_vm7 = vweird.f32 %v569_v5  ;;  %v213_v24 = vand.u32 2147483648, %v751_v0  ;;  %vm781_vm9 = vmor %vm177_vm2, %vm178_vm3 }
  0xac   :  { %v174_v13 = vsub.f32 1.0, %v173_v9  ;;  %v211_v31 = vand.u32 2147483647, %v751_v0  ;;  %vm224_vm12 = vmor %vm222_vm10, %vm223_vm7  ;;  %vm197_vm1 = vcmp.eq.f32.partialorder %v196_v34, 8.507059e+37 }
  0xad   :  { %v219_v11 = vsub.f32 1.0, %v218_v7  ;;  %v190_v16 = vmul.f32 %v565_v3, %v189_v12  ;;  %v214_v42 = vor.u32 1.1754944e-38, %v213_v24 }
  0xae   :  { %v175_v17 = vmul.f32 %v567_v4, %v174_v13  ;;  %vm212_vm14 = vcmp.eq.f32.partialorder %v211_v31, 8.507059e+37 }
  0xaf   :  { %v220_v15 = vmul.f32 %v569_v5, %v219_v11  ;;  %v191_v25 = vadd.f32 %v565_v3, %v190_v16 }
  0xb0   :  { %v571_v6 = vpop.eup %570  ;;  %v176_v28 = vadd.f32 %v567_v4, %v175_v17 }
  0xb1   :  { %v203_v10 = vmul.f32 %v571_v6, %v751_v0  ;;  %vm208_vm6 = vweird.f32 %v571_v6  ;;  %v221_v23 = vadd.f32 %v569_v5, %v220_v15  ;;  %v195_v43 = vsel %vm774_vm8, %v565_v3, %v191_v25 }
  0xb2   :  { %vm788_vm11 = vmor %vm207_vm5, %vm208_vm6  ;;  %v180_v47 = vsel %vm781_vm9, %v567_v4, %v176_v28  ;;  %v200_v51 = vsel %vm197_vm1, %v199_v36, %v195_v43 }
  0xb3   :  { %v204_v14 = vsub.f32 1.0, %v203_v10  ;;  %v225_v40 = vsel %vm224_vm12, %v569_v5, %v221_v23  ;;  %v185_v52 = vsel %vm793_vm13, %v184_v41, %v180_v47  ;;  %v233_v55 = vmul.f32 %v200_v51, %v701_v37 }
  0xb4   :  { %v230_v49 = vsel %vm227_vm15, %v229_v45, %v225_v40  ;;  %v232_v57 = vmul.f32 %v185_v52, %v716_v44 }
  0xb5   :  { %v205_v18 = vmul.f32 %v571_v6, %v204_v14  ;;  %v235_v54 = vmul.f32 %v230_v49, %v704_v39  ;;  %v599_v39 = vmov 0.0  }
  0xb6   :  { %21 = vst.msk [vmem:[#allocation2] sm:$0xff] %vm20_vm0, %v599_v39 }
  0xb7   :  { %v206_v30 = vadd.f32 %v571_v6, %v205_v18  ;;  %22 = vst.msk [vmem:[#allocation2 + $0x8] sm:$0xff] %vm20_vm0, %v599_v39 }
  0xb9   :  { %v210_v48 = vsel %vm788_vm11, %v571_v6, %v206_v30 }
  0xba   :  { %v215_v53 = vsel %vm212_vm14, %v214_v42, %v210_v48 }
  0xbb   :  { %v234_v58 = vmul.f32 %v215_v53, %v719_v46 }
  0xbd   :  { %v258_v44 = vld [vmem:[#allocation2] sm:$0xff] }
  0xbe   :  { %v259_v6 = vld [vmem:[#allocation2 + $0x8] sm:$0xff] }
 0x103   :  { %v241_v19 = vpop.permute.xlu0 %240 }
 0x10b   :  { %v245_v38 = vpop.permute.xlu1 %244  ;;  %v243_v50 = vpop.permute.xlu0 %242 }
 0x10c   :  { %v248_v56 = vsel %vm20_vm0, %v241_v19, %v243_v50  ;;  %v255_v60 = vmul.f32 %v243_v50, %v233_v55 }
 0x10d   :  { %v254_v63 = vmul.f32 %v248_v56, %v232_v57 }
 0x113   :  { %v247_v59 = vpop.permute.xlu1 %246 }
 0x114   :  { %v249_v61 = vsel %vm20_vm0, %v245_v38, %v247_v59  ;;  %v257_v62 = vmul.f32 %v247_v59, %v235_v54 }
 0x115   :  { %v256_v0 = vmul.f32 %v249_v61, %v234_v58 }
 0x116   :  { %v261_v1 = vpack.c.bf16 %v257_v62, %v255_v60 }
 0x117   :  { %v260_v2 = vpack.c.bf16 %v256_v0, %v254_v63 }
 0x118   :  { %525 = vmatmul.msk.bf16.vlgmr.msrb.gmra.mxu0 %vm20_vm0, %v261_v1 }
 0x119   :  { %369 = vmatmul.bf16.vlgmr.msra.gmra.mxu3 %v260_v2 }
 0x195   :  { %v384_v37 = vpop.f32.mrf.mxu0 }
 0x19c   :  { %v370_v46 = vpop.f32.mrf.mxu3 }
 0x19d   :  { %v385_v3 = vadd.f32 %v384_v37, %v370_v46  ;;  %v386_v5 = vpop.f32.mrf.mxu0 }
 0x19f   :  { %v389_v4 = vadd.f32 %v385_v3, %v258_v44 }
 0x1a1   :  { %391 = vst.msk [vmem:[#allocation2] sm:$0xff] %vm20_vm0, %v389_v4 }
 0x1a4   :  { %v372_v7 = vpop.f32.mrf.mxu3 }
 0x1a5   :  { %v387_v8 = vadd.f32 %v386_v5, %v372_v7 }
 0x1a7   :  { %v390_v9 = vadd.f32 %v387_v8, %v259_v6 }
 0x1a8   :  { %v396_v10 = vld [vmem:[#allocation2] sm:$0xff] }
 0x1a9   :  { %392 = vst.msk [vmem:[#allocation2 + $0x8] sm:$0xff] %vm20_vm0, %v390_v9 }
 0x1aa   :  { %398 = vst.msk [vmem:[#allocation3] sm:$0xff] %vm20_vm0, %v396_v10 }
 0x1b0   :  { %v397_v11 = vld [vmem:[#allocation2 + $0x8] sm:$0xff] }
 0x1b1   :  { %399 = vst.msk [vmem:[#allocation3 + $0x8] sm:$0xff] %vm20_vm0, %v397_v11 }
 0x1b2   :  { %412 = dma.vmem_to_hbm [thread:$0]  %s405_s4, 256, %s407_s7, [#allocation4], %s601_s0, %s601_s0, %s602_s1  }
 0x1b3   :  { %596 = dma.done.wait [#allocation4], 256  }
 0x1b4   :  { %597 = vsyncadd [#allocation4], 4294967040 }
 0x1b5   :  { %417 = vsyncpa [#allocation4], 1 }

</bundles_post_ra>
